<compile_context>
chip_gen: v5e
topology: v5e:2x2
jax: 0.10.0
libtpu: 0.0.40
codegen_flags: <defaults>
</compile_context>

<pallas_src>
import functools

import jax
import jax.numpy as jnp
from jax.experimental import pallas as pl
from jax.experimental.pallas import tpu as pltpu


# ----------------------------------------------------------------------------
# helpers
# ----------------------------------------------------------------------------
def _round_up(v, m):
    return ((v + m - 1) // m) * m


def _pad2(a, rows, cols):
    r, c = a.shape
    if r == rows and c == cols:
        return a
    return jnp.pad(a, ((0, rows - r), (0, cols - c)))


# ----------------------------------------------------------------------------
# Fused path: all layers + all k hops in one pallas_call (small / medium N)
# ----------------------------------------------------------------------------
def _sgc_fused_kernel(dinv_ref, adj_ref, x_ref, *rest, k, transform_first):
    w_refs = rest[:-1]
    o_ref = rest[-1]

    dinv = dinv_ref[...]                                  # [N, 1] f32
    a_bf16 = adj_ref[...].astype(jnp.bfloat16)            # 0/1-valued -> exact
    h = x_ref[...]                                        # [N, F0] f32

    def propagate(hh):
        # h <- D^{-1/2} (A (D^{-1/2} h)) ; normalization folded into features
        hs = (dinv * hh).astype(jnp.bfloat16)
        return dinv * jnp.dot(a_bf16, hs, preferred_element_type=jnp.float32)

    for li, w_ref in enumerate(w_refs):                   # layers fused in-kernel
        w = w_ref[...]
        if transform_first[li]:                           # propagate the narrow side
            h = jnp.dot(h, w, preferred_element_type=jnp.float32)
            for _ in range(k):
                h = propagate(h)
        else:
            for _ in range(k):
                h = propagate(h)
            h = jnp.dot(h, w, preferred_element_type=jnp.float32)
        h = jnp.maximum(h, 0.0)                           # ReLU after every layer

    o_ref[...] = h.astype(o_ref.dtype)


def _sgc_fused_call(adj_p, dinv, x_p, w_pads, *, k, transform_first):
    n_pad = adj_p.shape[0]
    f_out = w_pads[-1].shape[1]
    kernel = functools.partial(
        _sgc_fused_kernel, k=k, transform_first=tuple(transform_first))
    # No grid: every operand is a whole-array VMEM block; used only when the
    # estimated footprint is well below the default scoped VMEM limit
    # (16 MiB v5e / 32 MiB v6e+v7x) -- otherwise the tiled path is taken.
    return pl.pallas_call(
        kernel,
        out_shape=jax.ShapeDtypeStruct((n_pad, f_out), jnp.float32),
    )(dinv, adj_p, x_p, *w_pads)


# ----------------------------------------------------------------------------
# Tiled path: row-panel sweep per hop (large N / v7x 64 MiB VMEM budget)
# ----------------------------------------------------------------------------
def _propagate_kernel(dinv_all_ref, dinv_row_ref, h_ref, a_ref, o_ref, *, relu):
    # a_ref is a streamed (row_tile, N) panel of A; h / dinv stay resident.
    hs = (dinv_all_ref[...] * h_ref[...]).astype(jnp.bfloat16)
    acc = jnp.dot(a_ref[...].astype(jnp.bfloat16), hs,
                  preferred_element_type=jnp.float32)
    out = dinv_row_ref[...] * acc
    if relu:
        out = jnp.maximum(out, 0.0)
    o_ref[...] = out.astype(o_ref.dtype)


def _propagate_call(adj_p, dinv, h, *, relu, row_tile):
    n_pad = adj_p.shape[0]
    f = h.shape[1]
    kernel = functools.partial(_propagate_kernel, relu=relu)
    return pl.pallas_call(
        kernel,
        out_shape=jax.ShapeDtypeStruct((n_pad, f), jnp.float32),
        grid=(n_pad // row_tile,),
        in_specs=[
            pl.BlockSpec((n_pad, 1), lambda i: (0, 0)),        # dinv (full, resident)
            pl.BlockSpec((row_tile, 1), lambda i: (i, 0)),     # dinv row panel
            pl.BlockSpec((n_pad, f), lambda i: (0, 0)),        # h (full, resident)
            pl.BlockSpec((row_tile, n_pad), lambda i: (i, 0)),  # A row panel (streamed)
        ],
        out_specs=pl.BlockSpec((row_tile, f), lambda i: (i, 0)),
        compiler_params=pltpu.CompilerParams(
            dimension_semantics=("parallel",)),                # megacore on v7x
    )(dinv, dinv, h, adj_p)


def _dense_kernel(h_ref, w_ref, o_ref, *, relu):
    out = jnp.dot(h_ref[...], w_ref[...], preferred_element_type=jnp.float32)
    if relu:
        out = jnp.maximum(out, 0.0)
    o_ref[...] = out.astype(o_ref.dtype)


def _dense_call(h, w_p, *, relu, row_tile):
    n_pad, f_in = h.shape
    f_out = w_p.shape[1]
    kernel = functools.partial(_dense_kernel, relu=relu)
    return pl.pallas_call(
        kernel,
        out_shape=jax.ShapeDtypeStruct((n_pad, f_out), jnp.float32),
        grid=(n_pad // row_tile,),
        in_specs=[
            pl.BlockSpec((row_tile, f_in), lambda i: (i, 0)),
            pl.BlockSpec((f_in, f_out), lambda i: (0, 0)),
        ],
        out_specs=pl.BlockSpec((row_tile, f_out), lambda i: (i, 0)),
        compiler_params=pltpu.CompilerParams(
            dimension_semantics=("parallel",)),
    )(h, w_p)


def _layer_tiled(adj_p, dinv, h, w_p, *, k, transform_first, row_tile):
    # k hops are sequential grid sweeps (hop t+1 needs all rows of hop t).
    if transform_first:
        h = _dense_call(h, w_p, relu=False, row_tile=row_tile)
        for t in range(k):
            h = _propagate_call(adj_p, dinv, h, relu=(t == k - 1),
                                row_tile=row_tile)
    else:
        for _ in range(k):
            h = _propagate_call(adj_p, dinv, h, relu=False, row_tile=row_tile)
        h = _dense_call(h, w_p, relu=True, row_tile=row_tile)
    return h


# ----------------------------------------------------------------------------
# Forward
# ----------------------------------------------------------------------------
def sgc_forward(adj, x, weights, *, k=2, row_tile=256, force_tiled=False):
    n = adj.shape[0]
    f_out_final = weights[-1].shape[1]

    dims = [x.shape[1]] + [w.shape[1] for w in weights]
    f_pads = [_round_up(max(d, 1), 128) for d in dims]     # lane-dense features

    # Rough VMEM footprint of the fused whole-array path (A f32 + bf16 copy,
    # h double-width slack, weights); stay well below the default scoped limit.
    n_pad8 = _round_up(n, 8)
    est = (n_pad8 * n_pad8 * 6
           + 4 * n_pad8 * max(f_pads) * 4
           + sum(f_pads[i] * f_pads[i + 1] * 4 for i in range(len(weights))))
    use_fused = (not force_tiled) and est <= 8 * 1024 * 1024

    if use_fused:
        n_pad = n_pad8
        rt = n_pad
    else:
        rt = max(8, min(_round_up(row_tile, 8), _round_up(n, 8)))
        n_pad = _round_up(n, rt)

    adj_p = _pad2(adj.astype(jnp.float32), n_pad, n_pad)
    x_p = _pad2(x.astype(jnp.float32), n_pad, f_pads[0])
    w_pads = [_pad2(weights[i].astype(jnp.float32), f_pads[i], f_pads[i + 1])
              for i in range(len(weights))]
    # Propagate whichever (padded) feature width is narrower.
    transform_first = [f_pads[i + 1] < f_pads[i] for i in range(len(weights))]

    # Hoisted: computed once per forward, shared by every layer and hop.
    deg = jnp.sum(adj_p, axis=1, keepdims=True)             # [N_pad, 1]
    dinv = jnp.where(deg > 0.0, jax.lax.rsqrt(deg), 0.0).astype(jnp.float32)

    if use_fused:
        out = _sgc_fused_call(adj_p, dinv, x_p, w_pads, k=k,
                              transform_first=transform_first)
    else:
        h = x_p
        for li, w_p in enumerate(w_pads):
            h = _layer_tiled(adj_p, dinv, h, w_p, k=k,
                             transform_first=transform_first[li], row_tile=rt)
        out = h

    return out[:n, :f_out_final]


class SGCPallas:
    """JAX/Pallas port of the PyTorch SGC module (bias=False, dropout unused)."""

    def __init__(self, in_feature, layers=(64,), drop_out_rate=0.0, k=2, key=None):
        dims = [in_feature] + list(layers)
        if len(dims) < 2:
            raise Exception("sorry, you need at least two layer")
        self.k = k
        self.weights = []
        key = jax.random.PRNGKey(0) if key is None else key
        for i in range(len(dims) - 1):
            key, sub = jax.random.split(key)
            fan_in, fan_out = dims[i], dims[i + 1]
            limit = (6.0 / (fan_in + fan_out)) ** 0.5       # Xavier-uniform-ish
            w = jax.random.uniform(
                sub, (fan_in, fan_out), jnp.float32, -limit, limit)
            self.weights.append(w)

    def __call__(self, adj, x, *, row_tile=256, force_tiled=False):
        return sgc_forward(adj, x, self.weights, k=self.k,
                           row_tile=row_tile, force_tiled=force_tiled)


if __name__ == "__main__":
    key = jax.random.PRNGKey(0)
    k_adj, k_x, k_w = jax.random.split(key, 3)

    N = 32          # number of graph nodes
    IN_FEAT = 32    # input feature size
    LAYERS = [64]   # as in the PyTorch default
    K = 2           # propagation steps

    # Deterministic symmetric adjacency (undirected graph), no self-loops.
    raw = jax.random.uniform(k_adj, (N, N), jnp.float32)
    adj = (raw > 0.7).astype(jnp.float32)
    adj = jnp.maximum(adj, adj.T)
    adj = adj * (1.0 - jnp.eye(N, dtype=jnp.float32))

    x = jax.random.normal(k_x, (N, IN_FEAT), jnp.float32)

    model = SGCPallas(IN_FEAT, layers=LAYERS, k=K, key=k_w)

    # Fused single-kernel path (auto-selected at this size).
    out_fused = jax.block_until_ready(model(adj, x))
    # Row-panel tiled path (forced with a small tile so both paths are tested).
    out_tiled = jax.block_until_ready(model(adj, x, row_tile=16, force_tiled=True))

    # Pure-JAX f32 reference: relu( (D^-1/2 A D^-1/2)^k x W ) per layer.
    deg = jnp.sum(adj, axis=1, keepdims=True)
    dinv = jnp.where(deg > 0.0, jax.lax.rsqrt(deg), 0.0)
    a_norm = dinv * adj * dinv.T
    ref = x
    for w in model.weights:
        h = ref
        for _ in range(K):
            h = a_norm @ h
        ref = jnp.maximum(h @ w, 0.0)

    assert out_fused.shape == (N, LAYERS[-1])
    assert out_tiled.shape == (N, LAYERS[-1])
    assert bool(jnp.all(out_fused >= 0.0))                  # ReLU applied
    assert bool(jnp.allclose(out_fused, ref, rtol=5e-2, atol=5e-2))
    assert bool(jnp.allclose(out_tiled, ref, rtol=5e-2, atol=5e-2))
    print("KERNEL_OK")
</pallas_src>

<mosaic_0001>
module attributes {stable_mosaic.version = 11 : i64} {
  func.func @_sgc_fused_kernel(%arg0: memref<32x1xf32, #tpu.memory_space<vmem>>, %arg1: memref<32x32xf32, #tpu.memory_space<vmem>>, %arg2: memref<32x128xf32, #tpu.memory_space<vmem>>, %arg3: memref<128x128xf32, #tpu.memory_space<vmem>>, %arg4: memref<32x128xf32, #tpu.memory_space<vmem>>) attributes {dimension_semantics = [], scalar_prefetch = 0 : i64, scratch_operands = 0 : i64, tpu.core_type = #tpu.core_type<tc>} {
    %c0 = arith.constant 0 : index
    %c0_0 = arith.constant 0 : index
    %0 = vector.load %arg0[%c0, %c0_0] : memref<32x1xf32, #tpu.memory_space<vmem>>, vector<32x1xf32>
    %c0_1 = arith.constant 0 : index
    %c0_2 = arith.constant 0 : index
    %1 = vector.load %arg1[%c0_1, %c0_2] : memref<32x32xf32, #tpu.memory_space<vmem>>, vector<32x32xf32>
    %2 = arith.truncf %1 : vector<32x32xf32> to vector<32x32xbf16>
    %c0_3 = arith.constant 0 : index
    %c0_4 = arith.constant 0 : index
    %3 = vector.load %arg2[%c0_3, %c0_4] : memref<32x128xf32, #tpu.memory_space<vmem>>, vector<32x128xf32>
    %c0_5 = arith.constant 0 : index
    %c0_6 = arith.constant 0 : index
    %4 = vector.load %arg3[%c0_5, %c0_6] : memref<128x128xf32, #tpu.memory_space<vmem>>, vector<128x128xf32>
    %5 = vector.broadcast %0 : vector<32x1xf32> to vector<32x128xf32>
    %6 = arith.mulf %5, %3 : vector<32x128xf32>
    %7 = arith.truncf %6 : vector<32x128xf32> to vector<32x128xbf16>
    %cst = arith.constant dense<0.000000e+00> : vector<32x128xf32>
    %8 = tpu.matmul %2, %7, %cst {dimension_numbers = #tpu.dot_dimension_numbers<[1], [0], [0], [1], [0, 0, 1, 1], [], []>} : vector<32x32xbf16>, vector<32x128xbf16>, vector<32x128xf32> -> vector<32x128xf32>
    %9 = vector.broadcast %0 : vector<32x1xf32> to vector<32x128xf32>
    %10 = arith.mulf %9, %8 : vector<32x128xf32>
    %11 = vector.broadcast %0 : vector<32x1xf32> to vector<32x128xf32>
    %12 = arith.mulf %11, %10 : vector<32x128xf32>
    %13 = arith.truncf %12 : vector<32x128xf32> to vector<32x128xbf16>
    %cst_7 = arith.constant dense<0.000000e+00> : vector<32x128xf32>
    %14 = tpu.matmul %2, %13, %cst_7 {dimension_numbers = #tpu.dot_dimension_numbers<[1], [0], [0], [1], [0, 0, 1, 1], [], []>} : vector<32x32xbf16>, vector<32x128xbf16>, vector<32x128xf32> -> vector<32x128xf32>
    %15 = vector.broadcast %0 : vector<32x1xf32> to vector<32x128xf32>
    %16 = arith.mulf %15, %14 : vector<32x128xf32>
    %cst_8 = arith.constant dense<0.000000e+00> : vector<32x128xf32>
    %17 = tpu.matmul %16, %4, %cst_8 {dimension_numbers = #tpu.dot_dimension_numbers<[1], [0], [0], [1], [0, 0, 1, 1], [], []>} : vector<32x128xf32>, vector<128x128xf32>, vector<32x128xf32> -> vector<32x128xf32>
    %cst_9 = arith.constant 0.000000e+00 : f32
    %18 = vector.broadcast %cst_9 : f32 to vector<32x128xf32>
    %19 = arith.maximumf %17, %18 : vector<32x128xf32>
    %c0_10 = arith.constant 0 : index
    %c0_11 = arith.constant 0 : index
    %20 = vector.load %arg4[%c0_10, %c0_11] : memref<32x128xf32, #tpu.memory_space<vmem>>, vector<32x128xf32>
    tpu.vector_store %arg4[%c0_10, %c0_11], %19 {strides = array<i32>} : memref<32x128xf32, #tpu.memory_space<vmem>>, vector<32x128xf32>,
    return
  }
}

</mosaic_0001>

<bundles_post_ra>
// kernel: tpu_custom_call.1
= control target key start
LH: loop header
LB: loop body
LE: loop exit
PB: predicated region body
PF: predicated region fallthrough
CT: control target
= control target key end

     0   :  { %9 = vsyncpa [#allocation3], 0  ;;  %s430_s0 = inlined_call_operand.vmem [shape: f32[32,1], index: 0, kind: input, shape index: {}]   ;;  %s431_s1 = inlined_call_operand.vmem [shape: f32[32,32], index: 1, kind: input, shape index: {}]   ;;  %s432_s2 = inlined_call_operand.hbm [shape: f32[32,128], index: 2, kind: input, shape index: {}]   ;;  %s433_s3 = inlined_call_operand.hbm [shape: f32[128,128], index: 3, kind: input, shape index: {}]   ;;  %s434_s4 = inlined_call_operand.hbm [shape: f32[32,128], index: 4, kind: output, shape index: {}]  }
   0x1   :  { %10 = vsyncpa [#allocation6], 0 }
   0x2   :  { %11 = vsyncpa [#allocation4], 0  ;;  %s20_s17 = sshll.u32 %s432_s2, 4  ;;  %s329_s18 = smov [#allocation2]   ;;  %s21_s17 = int_to_ptr.hbm [resolvable:$true] %s20_s17 }
   0x3   :  { %s22_s19 = sshll.u32 %s329_s18, 4  ;;  %s33_s22 = sshll.u32 %s433_s3, 4  ;;  %s23_s19 = int_to_ptr.vmem [resolvable:$true] %s22_s19  ;;  %s34_s22 = int_to_ptr.hbm [resolvable:$true] %s33_s22 }
   0x4   :  { %s330_s23 = smov 128   ;;  %s331_s24 = smov 8  }
   0x5   :  { %28 = dma.hbm_to_vmem [thread:$0]  %s21_s17, 512, %s23_s19, [#allocation3], %s330_s23, %s330_s23, %s331_s24  }
   0x6   :  { %s332_s25 = smov [#allocation5]  }
   0x7   :  { %s35_s26 = sshll.u32 %s332_s25, 4  ;;  %s36_s26 = int_to_ptr.vmem [resolvable:$true] %s35_s26 }
   0x8   :  { %41 = dma.hbm_to_vmem [thread:$0]  %s34_s22, 2048, %s36_s26, [#allocation6], %s330_s23, %s330_s23, %s331_s24  }
   0x9   :  { %323 = dma.done.wait [#allocation3], 512  }
   0xa   :  { %324 = vsyncadd [#allocation3], 4294966784 }
   0xb   :  { %325 = dma.done.wait [#allocation6], 2048  }
   0xc   :  { %326 = vsyncadd [#allocation6], 4294965248  ;;  %v333_v0 = vmov 0   ;;  %v53_v1 = vld [vmem:[%s430_s0 + $0x10] sm:$0xff]  ;;  %v51_v2 = vld [vmem:[%s430_s0] sm:$0xff]  ;;  %vm107_vm0 = vcmask 261120  }
   0xd   :  { %250 = vset.pattern.permute.xlu1 %v333_v0  ;;  %249 = vset.pattern.permute.xlu0 %v333_v0  ;;  %v54_v3 = vld [vmem:[%s430_s0 + $0x18] sm:$0xff]  ;;  %v52_v4 = vld [vmem:[%s430_s0 + $0x8] sm:$0xff]  ;;  %v63_v7 = vld [vmem:[#allocation2 + $0x10] sm:$0xff]  ;;  %s209_s17 = sshll.u32 %s434_s4, 4  ;;  %s210_s17 = int_to_ptr.hbm [resolvable:$true] %s209_s17 }
   0xe   :  { %93 = vperm.xlu0 %249, %v53_v1   ;;  %83 = vperm.xlu1 %250, %v51_v2   ;;  %v64_v8 = vld [vmem:[#allocation2 + $0x18] sm:$0xff]  ;;  %v62_v11 = vld [vmem:[#allocation2 + $0x8] sm:$0xff]  ;;  %v61_v14 = vld [vmem:[#allocation2] sm:$0xff] }
   0xf   :  { %v55_v18 = vld [vmem:[%s431_s1] sm:$0xff]  ;;  %v56_v19 = vld [vmem:[%s431_s1 + $0x8] sm:$0xff]  ;;  %v57_v22 = vld [vmem:[%s431_s1 + $0x10] sm:$0xff] }
  0x10   :  { %v59_v21 = vpack.c.bf16 %v56_v19, %v55_v18  ;;  %v58_v23 = vld [vmem:[%s431_s1 + $0x18] sm:$0xff]  ;;  %v79_v29 = vld [vmem:[#allocation5 + $0x70] sm:$0xff]  ;;  %v78_v32 = vld [vmem:[#allocation5 + $0x68] sm:$0xff]  ;;  %s334_s1 = smov [#allocation7]  }
  0x11   :  { %v60_v24 = vpack.c.bf16 %v58_v23, %v57_v22  ;;  %v80_v28 = vld [vmem:[#allocation5 + $0x78] sm:$0xff]  ;;  %v77_v35 = vld [vmem:[#allocation5 + $0x60] sm:$0xff]  ;;  %v75_v42 = vld [vmem:[#allocation5 + $0x50] sm:$0xff]  ;;  %s207_s14 = sshll.u32 %s334_s1, 4  ;;  %s208_s14 = int_to_ptr.vmem [resolvable:$true] %s207_s14 }
  0x12   :  { %166 = vmatpush.msra.mxu2 %v80_v28  ;;  %227 = vmatpush.msra.mxu3 %v80_v28  ;;  %v76_v39 = vld [vmem:[#allocation5 + $0x58] sm:$0xff]  ;;  %v74_v44 = vld [vmem:[#allocation5 + $0x48] sm:$0xff]  ;;  %v73_v46 = vld [vmem:[#allocation5 + $0x40] sm:$0xff] }
  0x13   :  { %v72_v47 = vld [vmem:[#allocation5 + $0x38] sm:$0xff]  ;;  %v71_v48 = vld [vmem:[#allocation5 + $0x30] sm:$0xff]  ;;  %v70_v49 = vld [vmem:[#allocation5 + $0x28] sm:$0xff] }
  0x14   :  { %167 = vmatpush.msra.mxu2 %v79_v29  ;;  %228 = vmatpush.msra.mxu3 %v79_v29  ;;  %v69_v50 = vld [vmem:[#allocation5 + $0x20] sm:$0xff]  ;;  %v68_v51 = vld [vmem:[#allocation5 + $0x18] sm:$0xff]  ;;  %v67_v52 = vld [vmem:[#allocation5 + $0x10] sm:$0xff] }
  0x15   :  { %v66_v53 = vld [vmem:[#allocation5 + $0x8] sm:$0xff]  ;;  %v65_v54 = vld [vmem:[#allocation5] sm:$0xff] }
  0x16   :  { %98 = vperm.xlu0 %249, %v54_v3   ;;  %88 = vperm.xlu1 %250, %v52_v4  }
  0x17   :  { %168 = vmatpush.msra.mxu2 %v78_v32  ;;  %229 = vmatpush.msra.mxu3 %v78_v32 }
  0x19   :  { %169 = vmatpush.msra.mxu2 %v77_v35  ;;  %230 = vmatpush.msra.mxu3 %v77_v35 }
  0x1b   :  { %170 = vmatpush.msra.mxu2 %v76_v39  ;;  %231 = vmatpush.msra.mxu3 %v76_v39 }
  0x1d   :  { %171 = vmatpush.msra.mxu2 %v75_v42  ;;  %232 = vmatpush.msra.mxu3 %v75_v42 }
  0x1f   :  { %172 = vmatpush.msra.mxu2 %v74_v44  ;;  %233 = vmatpush.msra.mxu3 %v74_v44 }
  0x21   :  { %173 = vmatpush.msra.mxu2 %v73_v46  ;;  %234 = vmatpush.msra.mxu3 %v73_v46 }
  0x23   :  { %174 = vmatpush.msra.mxu2 %v72_v47  ;;  %235 = vmatpush.msra.mxu3 %v72_v47 }
  0x25   :  { %175 = vmatpush.msra.mxu2 %v71_v48  ;;  %236 = vmatpush.msra.mxu3 %v71_v48 }
  0x27   :  { %176 = vmatpush.msra.mxu2 %v70_v49  ;;  %237 = vmatpush.msra.mxu3 %v70_v49 }
  0x29   :  { %177 = vmatpush.msra.mxu2 %v69_v50  ;;  %238 = vmatpush.msra.mxu3 %v69_v50 }
  0x2b   :  { %178 = vmatpush.msra.mxu2 %v68_v51  ;;  %239 = vmatpush.msra.mxu3 %v68_v51 }
  0x2d   :  { %179 = vmatpush.msra.mxu2 %v67_v52  ;;  %240 = vmatpush.msra.mxu3 %v67_v52 }
  0x2f   :  { %180 = vmatpush.msra.mxu2 %v66_v53  ;;  %241 = vmatpush.msra.mxu3 %v66_v53 }
  0x31   :  { %181 = vmatpush.msra.mxu2 %v65_v54  ;;  %242 = vmatpush.msra.mxu3 %v65_v54 }
  0x80   :  { %v384_v5 = vpop.permute.xlu0 %93  ;;  %v386_v6 = vpop.permute.xlu1 %83 }
  0x81   :  { %v103_v12 = vmul.f32 %v384_v5, %v63_v7  ;;  %v101_v17 = vmul.f32 %v386_v6, %v61_v14 }
  0x88   :  { %v388_v9 = vpop.permute.xlu0 %98  ;;  %v390_v10 = vpop.permute.xlu1 %88 }
  0x89   :  { %v104_v13 = vmul.f32 %v388_v9, %v64_v8  ;;  %v102_v16 = vmul.f32 %v390_v10, %v62_v11 }
  0x8b   :  { %v106_v15 = vpack.c.bf16 %v104_v13, %v103_v12  ;;  %v105_v20 = vpack.c.bf16 %v102_v16, %v101_v17 }
  0x8d   :  { %120 = vmatpush.bf16.msra.mxu0 %v106_v15 }
  0x91   :  { %121 = vmatpush.bf16.msra.mxu0 %v105_v20 }
  0x94   :  { %223 = vmatmul.msk.bf16.vlgmr.msra.gmra.mxu0 %vm107_vm0, %v59_v21 }
  0xa4   :  { %224 = vmatmul.msk.bf16.gmra.mxu0 %vm107_vm0, %v60_v24 }
 0x111   :  { %v123_v25 = vpop.f32.mrf.mxu0 }
 0x112   :  { %v133_v36 = vmul.f32 %v123_v25, %v386_v6 }
 0x114   :  { %v137_v43 = vmul.f32 %v133_v36, %v386_v6 }
 0x119   :  { %v125_v26 = vpop.f32.mrf.mxu0 }
 0x11a   :  { %v134_v33 = vmul.f32 %v125_v26, %v390_v10 }
 0x11c   :  { %v138_v40 = vmul.f32 %v134_v33, %v390_v10 }
 0x11e   :  { %v141_v45 = vpack.c.bf16 %v138_v40, %v137_v43 }
 0x121   :  { %v128_v27 = vpop.f32.mrf.mxu0 }
 0x122   :  { %v135_v30 = vmul.f32 %v128_v27, %v384_v5 }
 0x124   :  { %v139_v37 = vmul.f32 %v135_v30, %v384_v5 }
 0x129   :  { %v130_v31 = vpop.f32.mrf.mxu0 }
 0x12a   :  { %v136_v34 = vmul.f32 %v130_v31, %v388_v9 }
 0x12c   :  { %v140_v38 = vmul.f32 %v136_v34, %v388_v9 }
 0x12e   :  { %v142_v41 = vpack.c.bf16 %v140_v38, %v139_v37 }
 0x130   :  { %149 = vmatpush.bf16.msra.mxu1 %v142_v41 }
 0x134   :  { %150 = vmatpush.bf16.msra.mxu1 %v141_v45 }
 0x137   :  { %225 = vmatmul.msk.bf16.vlgmr.msra.gmra.mxu1 %vm107_vm0, %v59_v21 }
 0x147   :  { %226 = vmatmul.msk.bf16.gmra.mxu1 %vm107_vm0, %v60_v24 }
 0x1b4   :  { %v152_v55 = vpop.f32.mrf.mxu1 }
 0x1b5   :  { %v162_v56 = vmul.f32 %v152_v55, %v386_v6 }
 0x1b7   :  { %182 = vmatmul.f32.vlgmr.msra.gmra.mxu2 %v162_v56 }
 0x1bc   :  { %v154_v57 = vpop.f32.mrf.mxu1 }
 0x1bd   :  { %v163_v58 = vmul.f32 %v154_v57, %v390_v10 }
 0x1bf   :  { %185 = vmatmul.f32.gmra.mxu2 %v163_v58 }
 0x1c4   :  { %v157_v59 = vpop.f32.mrf.mxu1 }
 0x1c5   :  { %v164_v60 = vmul.f32 %v157_v59, %v384_v5 }
 0x1c7   :  { %188 = vmatmul.f32.vlgmr.msra.gmra.mxu3 %v164_v60 }
 0x1cc   :  { %v159_v61 = vpop.f32.mrf.mxu1 }
 0x1cd   :  { %v165_v62 = vmul.f32 %v159_v61, %v388_v9 }
 0x1cf   :  { %191 = vmatmul.f32.gmra.mxu3 %v165_v62 }
 0x23a   :  { %v183_v63 = vpop.f32.mrf.mxu2 }
 0x23b   :  { %v195_v0 = vmax.f32 %v183_v63, 0.0 }
 0x23d   :  { %199 = vst [vmem:[#allocation7] sm:$0xff] %v195_v0 }
 0x242   :  { %v186_v1 = vpop.f32.mrf.mxu2 }
 0x243   :  { %v196_v2 = vmax.f32 %v186_v1, 0.0 }
 0x245   :  { %200 = vst [vmem:[#allocation7 + $0x8] sm:$0xff] %v196_v2 }
 0x24a   :  { %v189_v3 = vpop.f32.mrf.mxu3 }
 0x24b   :  { %v197_v4 = vmax.f32 %v189_v3, 0.0 }
 0x24d   :  { %201 = vst [vmem:[#allocation7 + $0x10] sm:$0xff] %v197_v4 }
 0x252   :  { %v192_v5 = vpop.f32.mrf.mxu3 }
 0x253   :  { %v198_v6 = vmax.f32 %v192_v5, 0.0 }
 0x255   :  { %202 = vst [vmem:[#allocation7 + $0x18] sm:$0xff] %v198_v6 }
 0x256   :  { %215 = dma.vmem_to_hbm [thread:$0]  %s208_s14, 512, %s210_s17, [#allocation4], %s330_s23, %s330_s23, %s331_s24  }
 0x257   :  { %327 = dma.done.wait [#allocation4], 512  }
 0x258   :  { %328 = vsyncadd [#allocation4], 4294966784 }
 0x259   :  { %220 = vsyncpa [#allocation3], 1 }
 0x25a   :  { %221 = vsyncpa [#allocation6], 1 }
 0x25b   :  { %222 = vsyncpa [#allocation4], 1 }

</bundles_post_ra>
